<compile_context>
chip_gen: v5e
topology: v5e:2x2
jax: 0.10.0
libtpu: 0.0.40
codegen_flags: <defaults>
</compile_context>

<pallas_src>
import functools

import jax
import jax.numpy as jnp
import numpy as np
from jax import lax
from jax.experimental import pallas as pl
from jax.experimental.pallas import tpu as pltpu


def _round_up(v: int, m: int) -> int:
    return (v + m - 1) // m * m


def _pick_tn(out_features: int) -> int:
    """Largest of {512, 256, 128} that minimizes padding of the output dim."""
    best, best_pad = 128, (-out_features) % 128
    for cand in (256, 512):
        pad = (-out_features) % cand
        if pad <= best_pad:
            best, best_pad = cand, pad
    return best


def _fused_kernel(x_ref, w_ref, b_ref, o_ref, q_ref, s_ref, acc_ref, *, maxv, tk):
    j = pl.program_id(2)          # output-column tile (within this p slice)
    k = pl.program_id(3)          # reduction (H) tile
    n_k = pl.num_programs(3)

    # Fake-quantize the resident activation row-tile once per (p, i) sweep.
    @pl.when(jnp.logical_and(j == 0, k == 0))
    def _quantize():
        x = x_ref[...]                                              # (tm, H) bf16
        # abs / row-max are exact in bf16; only the per-row max goes to f32.
        amax = jnp.max(jnp.abs(x), axis=-1, keepdims=True).astype(jnp.float32)
        scale = jnp.maximum(amax, 1e-5) / maxv                      # (tm, 1) f32
        inv = 1.0 / scale                                           # exact recip
        q = jnp.round(x * inv)                                      # f32, |q| <= maxv
        q_ref[...] = q.astype(q_ref.dtype)
        s_ref[...] = scale

    @pl.when(k == 0)
    def _zero_acc():
        acc_ref[...] = jnp.zeros_like(acc_ref)

    kk = pl.multiple_of(k * tk, 128)
    q_blk = q_ref[:, pl.ds(kk, tk)]                                 # (tm, tk)
    w_blk = w_ref[...]                                              # (tn, tk)
    if w_blk.dtype != q_blk.dtype:
        w_blk = w_blk.astype(q_blk.dtype)
    # Contract on H (last dim of both operands): acc += q @ W.T, f32 accumulate.
    acc_ref[...] += lax.dot_general(
        q_blk, w_blk,
        dimension_numbers=(((1,), (1,)), ((), ())),
        preferred_element_type=jnp.float32)

    @pl.when(k == n_k - 1)
    def _store():
        out = acc_ref[...] * s_ref[...] + b_ref[...].astype(jnp.float32)
        o_ref[...] = out.astype(o_ref.dtype)


def fake_w8a8_linear(x, weight, bias=None, *, wbit: int = 8,
                     tm=None, tn=None, tk=None):
    """x: (..., in_features); weight: (out_features, in_features); bias: (1, O)."""
    maxv = float(2 ** (wbit - 1) - 1)
    orig_shape = x.shape
    H = int(orig_shape[-1])
    M = int(np.prod(orig_shape[:-1])) if len(orig_shape) > 1 else 1
    O, Hw = weight.shape
    assert Hw == H, "weight in_features must match activation hidden size"

    # torch.half weights map to bf16 on TPU; f32 weights stay f32 (f32 matmul).
    if weight.dtype == jnp.float32:
        w_in = weight
        q_dtype = jnp.float32
    else:
        w_in = weight if weight.dtype == jnp.bfloat16 else weight.astype(jnp.bfloat16)
        # round(x/scale) is exact in bf16 only while maxv <= 256 (wbit <= 9).
        q_dtype = jnp.bfloat16 if maxv <= 256 else jnp.float32

    # ---- tile sizes --------------------------------------------------------
    H_pad = _round_up(H, 128)
    xb = jnp.dtype(x.dtype).itemsize
    if tm is None:
        tm = min(512, _round_up(M, 16))
        # Keep one x row-tile under ~8 MiB so large-H shapes still fit VMEM.
        tm = max(16, min(tm, ((8 << 20) // (xb * H_pad)) // 16 * 16))
    if tn is None:
        tn = _pick_tn(O)
    if tk is None:
        if H_pad <= 2048:
            tk = H_pad
        else:
            tk = next(c for c in (2048, 1024, 512, 256, 128) if H_pad % c == 0)
    M_pad = _round_up(M, tm)
    O_pad = _round_up(O, tn)
    assert M_pad % tm == 0 and O_pad % tn == 0 and H_pad % tk == 0

    n_m, n_n, n_k = M_pad // tm, O_pad // tn, H_pad // tk
    # Give both v7x TensorCores work in the single-row-tile (decode) regime.
    n_split = 2 if (n_m == 1 and n_n >= 2 and n_n % 2 == 0) else 1
    nj = n_n // n_split

    # ---- operand prep (pads only when a dim is not tile-divisible) ---------
    x2 = x.reshape(M, H)
    if (M_pad, H_pad) != (M, H):
        x2 = jnp.pad(x2, ((0, M_pad - M), (0, H_pad - H)))
    w2 = w_in
    if (O_pad, H_pad) != (O, H):
        w2 = jnp.pad(w2, ((0, O_pad - O), (0, H_pad - H)))
    if bias is None:
        b2 = jnp.zeros((1, O_pad), dtype=x.dtype)
    else:
        b2 = bias.reshape(1, O)
        if O_pad != O:
            b2 = jnp.pad(b2, ((0, 0), (0, O_pad - O)))

    # ---- VMEM budget -------------------------------------------------------
    wb = jnp.dtype(w2.dtype).itemsize
    qb = jnp.dtype(q_dtype).itemsize
    ob = jnp.dtype(x.dtype).itemsize
    est = (2 * tm * H_pad * xb            # x block (double buffered)
           + 2 * tn * tk * wb             # weight block
           + 2 * 8 * tn * ob              # bias block
           + 2 * tm * tn * ob             # out block
           + tm * H_pad * qb              # q scratch
           + tm * 128 * 4                 # row-scale scratch (lane padded)
           + tm * tn * 4)                 # f32 accumulator scratch
    try:
        vmem_cap = int(pltpu.get_tpu_info().vmem_capacity_bytes)
    except Exception:
        vmem_cap = 64 << 20                # conservative fallback (v7x size)
    vmem_limit = int(min(max(2 * est + (4 << 20), 16 << 20), vmem_cap * 3 // 4))

    kernel = functools.partial(_fused_kernel, maxv=maxv, tk=tk)
    out = pl.pallas_call(
        kernel,
        out_shape=jax.ShapeDtypeStruct((M_pad, O_pad), x.dtype),
        grid_spec=pltpu.PrefetchScalarGridSpec(
            num_scalar_prefetch=0,
            grid=(n_split, n_m, nj, n_k),
            in_specs=[
                # activation row tile: resident across the whole (n, k) sweep
                pl.BlockSpec((tm, H_pad), lambda p, i, j, k: (i, 0)),
                # weight tile, (O, H) layout, lane-dense in H
                pl.BlockSpec((tn, tk), lambda p, i, j, k, nj=nj: (p * nj + j, k)),
                # bias slice
                pl.BlockSpec((1, tn), lambda p, i, j, k, nj=nj: (0, p * nj + j)),
            ],
            out_specs=pl.BlockSpec(
                (tm, tn), lambda p, i, j, k, nj=nj: (i, p * nj + j)),
            scratch_shapes=[
                pltpu.VMEM((tm, H_pad), q_dtype),      # quantized activations
                pltpu.VMEM((tm, 1), jnp.float32),      # per-row scales
                pltpu.VMEM((tm, tn), jnp.float32),     # f32 accumulator
            ],
        ),
        compiler_params=pltpu.CompilerParams(
            dimension_semantics=("parallel", "parallel", "arbitrary", "arbitrary"),
            vmem_limit_bytes=vmem_limit,
        ),
    )(x2, w2, b2)

    out = out[:M, :O]
    return out.reshape(*orig_shape[:-1], O)


def _reference(x, weight, bias, wbit=8):
    maxv = float(2 ** (wbit - 1) - 1)
    xf = x.astype(jnp.float32)
    scales = jnp.maximum(jnp.max(jnp.abs(xf), axis=-1, keepdims=True), 1e-5) / maxv
    xq = jnp.round(xf / scales) * scales
    out = xq @ weight.astype(jnp.float32).T
    if bias is not None:
        out = out + bias.astype(jnp.float32)
    return out.astype(x.dtype)


if __name__ == "__main__":
    # Small shapes consistent with the module: batch=2, seq=8, hidden=256, out=512.
    batch, seq, in_features, out_features = 2, 8, 256, 512
    wbit = 8

    key = jax.random.PRNGKey(0)
    kx, kw, kb = jax.random.split(key, 3)

    x = jax.random.normal(kx, (batch, seq, in_features), dtype=jnp.float32).astype(jnp.bfloat16)
    weight = (0.05 * jax.random.normal(kw, (out_features, in_features), dtype=jnp.float32)).astype(jnp.bfloat16)
    bias = (0.1 * jax.random.normal(kb, (1, out_features), dtype=jnp.float32)).astype(jnp.bfloat16)

    # 1) Auto tile sizes (single N and K tile).
    out1 = jax.block_until_ready(fake_w8a8_linear(x, weight, bias, wbit=wbit))
    ref1 = _reference(x, weight, bias, wbit=wbit)
    np.testing.assert_allclose(np.asarray(out1, dtype=np.float32),
                               np.asarray(ref1, dtype=np.float32),
                               rtol=2e-2, atol=2e-2)

    # 2) Forced small tiles: exercises K accumulation, the N sweep over the
    #    resident quantized activations, the 2-way megacore split, and bias=None.
    out2 = jax.block_until_ready(
        fake_w8a8_linear(x, weight, None, wbit=wbit, tm=16, tn=128, tk=128))
    ref2 = _reference(x, weight, None, wbit=wbit)
    np.testing.assert_allclose(np.asarray(out2, dtype=np.float32),
                               np.asarray(ref2, dtype=np.float32),
                               rtol=2e-2, atol=2e-2)

    print("KERNEL_OK")
</pallas_src>

<mosaic_0001>
module attributes {stable_mosaic.version = 11 : i64} {
  func.func @_fused_kernel(%arg0: i32, %arg1: i32, %arg2: i32, %arg3: i32, %arg4: memref<16x256xbf16, #tpu.memory_space<vmem>>, %arg5: memref<512x256xbf16, #tpu.memory_space<vmem>>, %arg6: memref<1x512xbf16, #tpu.memory_space<vmem>>, %arg7: memref<16x512xbf16, #tpu.memory_space<vmem>>, %arg8: memref<16x256xbf16, #tpu.memory_space<vmem>>, %arg9: memref<16x1xf32, #tpu.memory_space<vmem>>, %arg10: memref<16x512xf32, #tpu.memory_space<vmem>>) attributes {dimension_semantics = [#tpu.dimension_semantics<parallel>, #tpu.dimension_semantics<parallel>, #tpu.dimension_semantics<arbitrary>, #tpu.dimension_semantics<arbitrary>], iteration_bounds = array<i64: 1, 1, 1, 1>, scalar_prefetch = 0 : i64, scratch_operands = 3 : i64, tpu.core_type = #tpu.core_type<tc>, window_params = [{transform_indices = @transform_0, window_bounds = array<i64: 16, 256>}, {transform_indices = @transform_1, window_bounds = array<i64: 512, 256>}, {transform_indices = @transform_2, window_bounds = array<i64: 1, 512>}, {transform_indices = @transform_3, window_bounds = array<i64: 16, 512>}]} {
    %c0_i32 = arith.constant 0 : i32
    %0 = arith.cmpi eq, %arg2, %c0_i32 : i32
    %c0_i32_0 = arith.constant 0 : i32
    %1 = arith.cmpi eq, %arg3, %c0_i32_0 : i32
    %2 = arith.andi %0, %1 : i1
    %3 = arith.extui %2 : i1 to i32
    %c0_i32_1 = arith.constant 0 : i32
    %4 = arith.cmpi ne, %3, %c0_i32_1 : i32
    scf.if %4 {
      %c0_12 = arith.constant 0 : index
      %c0_13 = arith.constant 0 : index
      %20 = vector.load %arg4[%c0_12, %c0_13] : memref<16x256xbf16, #tpu.memory_space<vmem>>, vector<16x256xbf16>
      %21 = math.absf %20 : vector<16x256xbf16>
      %cst_14 = arith.constant dense<0xFF80> : vector<16xbf16>
      %22 = vector.multi_reduction <maximumf>, %21, %cst_14 [1] : vector<16x256xbf16> to vector<16xbf16>
      %23 = vector.shape_cast %22 : vector<16xbf16> to vector<16x1xbf16>
      %24 = arith.extf %23 : vector<16x1xbf16> to vector<16x1xf32>
      %cst_15 = arith.constant 9.99999974E-6 : f32
      %25 = vector.broadcast %cst_15 : f32 to vector<16x1xf32>
      %26 = arith.maximumf %24, %25 : vector<16x1xf32>
      %cst_16 = arith.constant 1.270000e+02 : f32
      %27 = vector.broadcast %cst_16 : f32 to vector<16x1xf32>
      %28 = arith.divf %26, %27 : vector<16x1xf32>
      %cst_17 = arith.constant 1.000000e+00 : f32
      %29 = vector.broadcast %cst_17 : f32 to vector<16x1xf32>
      %30 = arith.divf %29, %28 : vector<16x1xf32>
      %31 = arith.extf %20 : vector<16x256xbf16> to vector<16x256xf32>
      %32 = vector.broadcast %30 : vector<16x1xf32> to vector<16x256xf32>
      %33 = arith.mulf %31, %32 : vector<16x256xf32>
      %34 = math.roundeven %33 : vector<16x256xf32>
      %35 = arith.truncf %34 : vector<16x256xf32> to vector<16x256xbf16>
      %c0_18 = arith.constant 0 : index
      %c0_19 = arith.constant 0 : index
      %36 = vector.load %arg8[%c0_18, %c0_19] : memref<16x256xbf16, #tpu.memory_space<vmem>>, vector<16x256xbf16>
      tpu.vector_store %arg8[%c0_18, %c0_19], %35 {strides = array<i32>} : memref<16x256xbf16, #tpu.memory_space<vmem>>, vector<16x256xbf16>,
      %c0_20 = arith.constant 0 : index
      %c0_21 = arith.constant 0 : index
      %37 = vector.load %arg9[%c0_20, %c0_21] : memref<16x1xf32, #tpu.memory_space<vmem>>, vector<16x1xf32>
      tpu.vector_store %arg9[%c0_20, %c0_21], %28 {strides = array<i32>} : memref<16x1xf32, #tpu.memory_space<vmem>>, vector<16x1xf32>,
    } else {
    }
    %c0_i32_2 = arith.constant 0 : i32
    %5 = arith.cmpi eq, %arg3, %c0_i32_2 : i32
    %6 = arith.extui %5 : i1 to i32
    %c0_i32_3 = arith.constant 0 : i32
    %7 = arith.cmpi ne, %6, %c0_i32_3 : i32
    scf.if %7 {
      %cst_12 = arith.constant 0.000000e+00 : f32
      %20 = vector.broadcast %cst_12 : f32 to vector<16x512xf32>
      %c0_13 = arith.constant 0 : index
      %c0_14 = arith.constant 0 : index
      %21 = vector.load %arg10[%c0_13, %c0_14] : memref<16x512xf32, #tpu.memory_space<vmem>>, vector<16x512xf32>
      tpu.vector_store %arg10[%c0_13, %c0_14], %20 {strides = array<i32>} : memref<16x512xf32, #tpu.memory_space<vmem>>, vector<16x512xf32>,
    } else {
    }
    %c256_i32 = arith.constant 256 : i32
    %8 = arith.muli %arg3, %c256_i32 : i32
    %9 = tpu.assume_multiple %8, 128 : i32
    %c0 = arith.constant 0 : index
    %10 = arith.index_cast %9 : i32 to index
    %11 = vector.load %arg8[%c0, %10] : memref<16x256xbf16, #tpu.memory_space<vmem>>, vector<16x256xbf16>
    %c0_4 = arith.constant 0 : index
    %c0_5 = arith.constant 0 : index
    %12 = vector.load %arg5[%c0_4, %c0_5] : memref<512x256xbf16, #tpu.memory_space<vmem>>, vector<512x256xbf16>
    %c0_6 = arith.constant 0 : index
    %c0_7 = arith.constant 0 : index
    %13 = vector.load %arg10[%c0_6, %c0_7] : memref<16x512xf32, #tpu.memory_space<vmem>>, vector<16x512xf32>
    %cst = arith.constant dense<0.000000e+00> : vector<16x512xf32>
    %14 = tpu.matmul %11, %12, %cst {dimension_numbers = #tpu.dot_dimension_numbers<[1], [1], [0], [0], [0, 0, 1, 0], [], []>} : vector<16x256xbf16>, vector<512x256xbf16>, vector<16x512xf32> -> vector<16x512xf32>
    %15 = arith.addf %13, %14 : vector<16x512xf32>
    %c0_8 = arith.constant 0 : index
    %c0_9 = arith.constant 0 : index
    %16 = vector.load %arg10[%c0_8, %c0_9] : memref<16x512xf32, #tpu.memory_space<vmem>>, vector<16x512xf32>
    tpu.vector_store %arg10[%c0_8, %c0_9], %15 {strides = array<i32>} : memref<16x512xf32, #tpu.memory_space<vmem>>, vector<16x512xf32>,
    %c0_i32_10 = arith.constant 0 : i32
    %17 = arith.cmpi eq, %arg3, %c0_i32_10 : i32
    %18 = arith.extui %17 : i1 to i32
    %c0_i32_11 = arith.constant 0 : i32
    %19 = arith.cmpi ne, %18, %c0_i32_11 : i32
    scf.if %19 {
      %c0_12 = arith.constant 0 : index
      %c0_13 = arith.constant 0 : index
      %20 = vector.load %arg10[%c0_12, %c0_13] : memref<16x512xf32, #tpu.memory_space<vmem>>, vector<16x512xf32>
      %c0_14 = arith.constant 0 : index
      %c0_15 = arith.constant 0 : index
      %21 = vector.load %arg9[%c0_14, %c0_15] : memref<16x1xf32, #tpu.memory_space<vmem>>, vector<16x1xf32>
      %22 = vector.broadcast %21 : vector<16x1xf32> to vector<16x512xf32>
      %23 = arith.mulf %20, %22 : vector<16x512xf32>
      %c0_16 = arith.constant 0 : index
      %c0_17 = arith.constant 0 : index
      %24 = vector.load %arg6[%c0_16, %c0_17] : memref<1x512xbf16, #tpu.memory_space<vmem>>, vector<1x512xbf16>
      %25 = arith.extf %24 : vector<1x512xbf16> to vector<1x512xf32>
      %26 = vector.broadcast %25 : vector<1x512xf32> to vector<16x512xf32>
      %27 = arith.addf %23, %26 : vector<16x512xf32>
      %28 = arith.truncf %27 : vector<16x512xf32> to vector<16x512xbf16>
      %c0_18 = arith.constant 0 : index
      %c0_19 = arith.constant 0 : index
      %29 = vector.load %arg7[%c0_18, %c0_19] : memref<16x512xbf16, #tpu.memory_space<vmem>>, vector<16x512xbf16>
      tpu.vector_store %arg7[%c0_18, %c0_19], %28 {strides = array<i32>} : memref<16x512xbf16, #tpu.memory_space<vmem>>, vector<16x512xbf16>,
    } else {
    }
    return
  }
  func.func @transform_0(%arg0: i32, %arg1: i32, %arg2: i32, %arg3: i32) -> (i32, i32) {
    %c0_i32 = arith.constant 0 : i32
    %c0_i32_0 = arith.constant 0 : i32
    return %arg1, %c0_i32 : i32, i32
  }
  func.func @transform_1(%arg0: i32, %arg1: i32, %arg2: i32, %arg3: i32) -> (i32, i32) {
    %c1_i32 = arith.constant 1 : i32
    %0 = arith.muli %arg0, %c1_i32 : i32
    %1 = arith.addi %0, %arg2 : i32
    %c0_i32 = arith.constant 0 : i32
    return %1, %arg3 : i32, i32
  }
  func.func @transform_2(%arg0: i32, %arg1: i32, %arg2: i32, %arg3: i32) -> (i32, i32) {
    %c1_i32 = arith.constant 1 : i32
    %0 = arith.muli %arg0, %c1_i32 : i32
    %1 = arith.addi %0, %arg2 : i32
    %c0_i32 = arith.constant 0 : i32
    %c0_i32_0 = arith.constant 0 : i32
    return %c0_i32, %1 : i32, i32
  }
  func.func @transform_3(%arg0: i32, %arg1: i32, %arg2: i32, %arg3: i32) -> (i32, i32) {
    %c1_i32 = arith.constant 1 : i32
    %0 = arith.muli %arg0, %c1_i32 : i32
    %1 = arith.addi %0, %arg2 : i32
    %c0_i32 = arith.constant 0 : i32
    return %arg1, %1 : i32, i32
  }
}

</mosaic_0001>

<bundles_post_ra>
// kernel: tpu_custom_call.1
= control target key start
LH: loop header
LB: loop body
LE: loop exit
PB: predicated region body
PF: predicated region fallthrough
CT: control target
= control target key end

     0   :  { %8 = vsyncpa [#allocation6], 0  ;;  %s1351_s0 = inlined_call_operand.hbm [shape: bf16[16,256], index: 0, kind: input, shape index: {}]   ;;  %s1352_s1 = inlined_call_operand.hbm [shape: bf16[512,256], index: 1, kind: input, shape index: {}]   ;;  %s1353_s2 = inlined_call_operand.hbm [shape: bf16[1,512], index: 2, kind: input, shape index: {}]   ;;  %s1354_s3 = inlined_call_operand.hbm [shape: bf16[16,512], index: 3, kind: output, shape index: {}]  }
   0x1   :  { %9 = vsyncpa [#allocation9], 0 }
   0x2   :  { %10 = vsyncpa [#allocation7], 0  ;;  %s33_s14 = sshll.u32 %s1352_s1, 4  ;;  %s1276_s15 = smov [#allocation8]   ;;  %s34_s14 = int_to_ptr.hbm [resolvable:$true] %s33_s14 }
   0x3   :  { %s35_s16 = sshll.u32 %s1276_s15, 4  ;;  %s15_s19 = sshll.u32 %s1351_s0, 4  ;;  %s36_s16 = int_to_ptr.vmem [resolvable:$true] %s35_s16  ;;  %s16_s19 = int_to_ptr.hbm [resolvable:$true] %s15_s19 }
   0x4   :  { %s1277_s20 = smov 128   ;;  %s1278_s21 = smov 8  }
   0x5   :  { %41 = dma.hbm_to_vmem [thread:$0]  %s34_s14, 8192, %s36_s16, [#allocation9], %s1277_s20, %s1277_s20, %s1278_s21  }
   0x6   :  { %s1279_s22 = smov [#allocation5]   ;;  %s50_s26 = sshll.u32 %s1353_s2, 4  ;;  %s51_s26 = int_to_ptr.hbm [resolvable:$true] %s50_s26 }
   0x7   :  { %s17_s23 = sshll.u32 %s1279_s22, 4  ;;  %s1280_s1 = smov [#allocation10]   ;;  %s18_s23 = int_to_ptr.vmem [resolvable:$true] %s17_s23 }
   0x8   :  { %23 = dma.hbm_to_vmem [thread:$0]  %s16_s19, 256, %s18_s23, [#allocation6], %s1277_s20, %s1277_s20, %s1278_s21  }
   0x9   :  { %s52_s27 = sshll.u32 %s1280_s1, 4  ;;  %s53_s27 = int_to_ptr.vmem [resolvable:$true] %s52_s27 }
   0xa   :  { %55 = dma.hbm_to_vmem [thread:$0]  %s51_s26, 64, %s53_s27, [#allocation9]  }
   0xb   :  { %1270 = dma.done.wait [#allocation6], 256  }
   0xc   :  { %1271 = vsyncadd [#allocation6], 4294967040 }
   0xd   :  { %1272 = dma.done.wait [#allocation9], 8256  }
   0xe   :  { %1273 = vsyncadd [#allocation9], 4294959040  ;;  %v1315_v0 = vld [vmem:[#allocation5] sm:$0xff]  ;;  %v1317_v1 = vld [vmem:[#allocation5 + $0x8] sm:$0xff]  ;;  %vm155_vm1 = vcmask 7168   ;;  %s1283_s0 = smov [#allocation11]  }
   0xf   :  { %v860_v2 = vld [vmem:[#allocation8 + $0x70] sm:$0xf]  ;;  %v82_v3 = vand.u32 2147450879, %v1315_v0  ;;  %v83_v4 = vand.u32 2147450879, %v1317_v1 }
  0x10   :  { %v1075_v5 = vld [vmem:[#allocation8 + $0x74] sm:$0xf0]  ;;  %v1074_v7 = vld [vmem:[#allocation8 + $0x74] sm:$0xf]  ;;  %v862_v8 = vld [vmem:[#allocation8 + $0x78] sm:$0xf0] }
  0x11   :  { %v861_v6 = vor.u32 %v1075_v5, %v860_v2  ;;  %v924_v9 = vld [vmem:[#allocation8 + $0xf0] sm:$0xf]  ;;  %v84_v10 = vunpack.c.l.bf16 %v82_v3  ;;  %v85_v11 = vunpack.c.h.bf16 %v82_v3  ;;  %v1091_v12 = vld [vmem:[#allocation8 + $0xf4] sm:$0xf0]  ;;  %v1090_v13 = vld [vmem:[#allocation8 + $0xf4] sm:$0xf]  ;;  %v865_v15 = vor.u32 %v1074_v7, %v862_v8 }
  0x12   :  { %v926_v14 = vld [vmem:[#allocation8 + $0xf8] sm:$0xf0]  ;;  %v925_v16 = vor.u32 %v1091_v12, %v924_v9  ;;  %v852_v19 = vld [vmem:[#allocation8 + $0x60] sm:$0xf]  ;;  %v1073_v20 = vld [vmem:[#allocation8 + $0x64] sm:$0xf0]  ;;  %v86_v22 = vunpack.c.l.bf16 %v83_v4  ;;  %v87_v23 = vunpack.c.h.bf16 %v83_v4 }
  0x13   :  { %578 = vmatpush.bf16.xpose.msra.mxu0 %v861_v6  ;;  %v929_v17 = vor.u32 %v1090_v13, %v926_v14  ;;  %v88_v18 = vmax.f32 %v84_v10, %v85_v11  ;;  %592 = vmatpush.bf16.xpose.msra.mxu1 %v865_v15  ;;  %v1072_v21 = vld [vmem:[#allocation8 + $0x64] sm:$0xf]  ;;  %v854_v24 = vld [vmem:[#allocation8 + $0x68] sm:$0xf0]  ;;  %v916_v25 = vld [vmem:[#allocation8 + $0xe0] sm:$0xf]  ;;  %v853_v27 = vor.u32 %v1073_v20, %v852_v19 }
  0x14   :  { %606 = vmatpush.bf16.xpose.msra.mxu2 %v925_v16  ;;  %v1089_v26 = vld [vmem:[#allocation8 + $0xe4] sm:$0xf0]  ;;  %v1088_v28 = vld [vmem:[#allocation8 + $0xe4] sm:$0xf]  ;;  %v918_v29 = vld [vmem:[#allocation8 + $0xe8] sm:$0xf0]  ;;  %v857_v30 = vor.u32 %v1072_v21, %v854_v24  ;;  %v91_v32 = vmax.f32 %v86_v22, %v87_v23 }
  0x15   :  { %89 = vmax.xlane.f32.xlu0 %v88_v18  ;;  %620 = vmatpush.bf16.xpose.msra.mxu3 %v929_v17  ;;  %v917_v31 = vor.u32 %v1089_v26, %v916_v25  ;;  %v921_v33 = vor.u32 %v1088_v28, %v918_v29  ;;  %v844_v34 = vld [vmem:[#allocation8 + $0x50] sm:$0xf]  ;;  %v1071_v35 = vld [vmem:[#allocation8 + $0x54] sm:$0xf0]  ;;  %v1070_v36 = vld [vmem:[#allocation8 + $0x54] sm:$0xf] }
  0x16   :  { %v846_v37 = vld [vmem:[#allocation8 + $0x58] sm:$0xf0]  ;;  %v908_v38 = vld [vmem:[#allocation8 + $0xd0] sm:$0xf]  ;;  %v1087_v39 = vld [vmem:[#allocation8 + $0xd4] sm:$0xf0]  ;;  %v845_v40 = vor.u32 %v1071_v35, %v844_v34 }
  0x17   :  { %v1086_v41 = vld [vmem:[#allocation8 + $0xd4] sm:$0xf]  ;;  %v910_v42 = vld [vmem:[#allocation8 + $0xd8] sm:$0xf0]  ;;  %v849_v43 = vor.u32 %v1070_v36, %v846_v37  ;;  %v909_v44 = vor.u32 %v1087_v39, %v908_v38  ;;  %v836_v46 = vld [vmem:[#allocation8 + $0x40] sm:$0xf] }
  0x18   :  { %v913_v45 = vor.u32 %v1086_v41, %v910_v42  ;;  %v1069_v47 = vld [vmem:[#allocation8 + $0x44] sm:$0xf0]  ;;  %v1068_v48 = vld [vmem:[#allocation8 + $0x44] sm:$0xf]  ;;  %v838_v49 = vld [vmem:[#allocation8 + $0x48] sm:$0xf0] }
  0x19   :  { %v900_v50 = vld [vmem:[#allocation8 + $0xc0] sm:$0xf]  ;;  %v1085_v51 = vld [vmem:[#allocation8 + $0xc4] sm:$0xf0]  ;;  %v837_v52 = vor.u32 %v1069_v47, %v836_v46  ;;  %v1084_v53 = vld [vmem:[#allocation8 + $0xc4] sm:$0xf]  ;;  %v841_v55 = vor.u32 %v1068_v48, %v838_v49 }
  0x1a   :  { %v902_v54 = vld [vmem:[#allocation8 + $0xc8] sm:$0xf0]  ;;  %v901_v56 = vor.u32 %v1085_v51, %v900_v50  ;;  %v828_v58 = vld [vmem:[#allocation8 + $0x30] sm:$0xf]  ;;  %v1067_v59 = vld [vmem:[#allocation8 + $0x34] sm:$0xf0] }
  0x1b   :  { %579 = vmatpush.bf16.xpose.msra.mxu0 %v853_v27  ;;  %593 = vmatpush.bf16.xpose.msra.mxu1 %v857_v30  ;;  %v905_v57 = vor.u32 %v1084_v53, %v902_v54  ;;  %v1066_v60 = vld [vmem:[#allocation8 + $0x34] sm:$0xf]  ;;  %v830_v61 = vld [vmem:[#allocation8 + $0x38] sm:$0xf0]  ;;  %v892_v62 = vld [vmem:[#allocation8 + $0xb0] sm:$0xf]  ;;  %v829_v2 = vor.u32 %v1067_v59, %v828_v58 }
  0x1c   :  { %607 = vmatpush.bf16.xpose.msra.mxu2 %v917_v31  ;;  %v1083_v63 = vld [vmem:[#allocation8 + $0xb4] sm:$0xf0]  ;;  %v1082_v3 = vld [vmem:[#allocation8 + $0xb4] sm:$0xf]  ;;  %v894_v4 = vld [vmem:[#allocation8 + $0xb8] sm:$0xf0]  ;;  %v833_v5 = vor.u32 %v1066_v60, %v830_v61 }
  0x1d   :  { %92 = vmax.xlane.f32.xlu0 %v91_v32  ;;  %621 = vmatpush.bf16.xpose.msra.mxu3 %v921_v33  ;;  %v893_v6 = vor.u32 %v1083_v63, %v892_v62  ;;  %v897_v7 = vor.u32 %v1082_v3, %v894_v4  ;;  %v820_v8 = vld [vmem:[#allocation8 + $0x20] sm:$0xf]  ;;  %v1065_v9 = vld [vmem:[#allocation8 + $0x24] sm:$0xf0]  ;;  %v1064_v10 = vld [vmem:[#allocation8 + $0x24] sm:$0xf] }
  0x1e   :  { %v822_v11 = vld [vmem:[#allocation8 + $0x28] sm:$0xf0]  ;;  %v884_v12 = vld [vmem:[#allocation8 + $0xa0] sm:$0xf]  ;;  %v1081_v13 = vld [vmem:[#allocation8 + $0xa4] sm:$0xf0]  ;;  %v821_v14 = vor.u32 %v1065_v9, %v820_v8 }
  0x1f   :  { %v1080_v15 = vld [vmem:[#allocation8 + $0xa4] sm:$0xf]  ;;  %v886_v16 = vld [vmem:[#allocation8 + $0xa8] sm:$0xf0]  ;;  %v825_v17 = vor.u32 %v1064_v10, %v822_v11  ;;  %v885_v18 = vor.u32 %v1081_v13, %v884_v12  ;;  %v812_v20 = vld [vmem:[#allocation8 + $0x10] sm:$0xf] }
  0x20   :  { %v889_v19 = vor.u32 %v1080_v15, %v886_v16  ;;  %v1063_v21 = vld [vmem:[#allocation8 + $0x14] sm:$0xf0]  ;;  %v1062_v22 = vld [vmem:[#allocation8 + $0x14] sm:$0xf]  ;;  %v814_v24 = vld [vmem:[#allocation8 + $0x18] sm:$0xf0] }
  0x21   :  { %v813_v23 = vor.u32 %v1063_v21, %v812_v20  ;;  %v876_v25 = vld [vmem:[#allocation8 + $0x90] sm:$0xf]  ;;  %v1079_v26 = vld [vmem:[#allocation8 + $0x94] sm:$0xf0]  ;;  %v817_v27 = vor.u32 %v1062_v22, %v814_v24  ;;  %v1078_v29 = vld [vmem:[#allocation8 + $0x94] sm:$0xf] }
  0x22   :  { %v877_v28 = vor.u32 %v1079_v26, %v876_v25  ;;  %v878_v30 = vld [vmem:[#allocation8 + $0x98] sm:$0xf0]  ;;  %v804_v32 = vld [vmem:[#allocation8] sm:$0xf]  ;;  %v1061_v33 = vld [vmem:[#allocation8 + $0x4] sm:$0xf0] }
  0x23   :  { %580 = vmatpush.bf16.xpose.msra.mxu0 %v845_v40  ;;  %594 = vmatpush.bf16.xpose.msra.mxu1 %v849_v43  ;;  %v881_v31 = vor.u32 %v1078_v29, %v878_v30  ;;  %v1060_v34 = vld [vmem:[#allocation8 + $0x4] sm:$0xf]  ;;  %v805_v35 = vor.u32 %v1061_v33, %v804_v32  ;;  %v806_v36 = vld [vmem:[#allocation8 + $0x8] sm:$0xf0]  ;;  %v868_v37 = vld [vmem:[#allocation8 + $0x80] sm:$0xf] }
  0x24   :  { %608 = vmatpush.bf16.xpose.msra.mxu2 %v909_v44  ;;  %v1077_v38 = vld [vmem:[#allocation8 + $0x84] sm:$0xf0]  ;;  %v809_v39 = vor.u32 %v1060_v34, %v806_v36  ;;  %v1076_v41 = vld [vmem:[#allocation8 + $0x84] sm:$0xf]  ;;  %v870_v42 = vld [vmem:[#allocation8 + $0x88] sm:$0xf0] }
  0x25   :  { %622 = vmatpush.bf16.xpose.msra.mxu3 %v913_v45  ;;  %v869_v40 = vor.u32 %v1077_v38, %v868_v37  ;;  %v988_v43 = vld [vmem:[#allocation8 + $0x170] sm:$0xf]  ;;  %v1281_v44 = vmov 127.0   ;;  %v873_v45 = vor.u32 %v1076_v41, %v870_v42  ;;  %v1107_v46 = vld [vmem:[#allocation8 + $0x174] sm:$0xf0]  ;;  %v1282_v60 = vmov 0  }
  0x26   :  { %1168 = vrcp.f32 %v1281_v44  ;;  %v1106_v47 = vld [vmem:[#allocation8 + $0x174] sm:$0xf]  ;;  %v990_v48 = vld [vmem:[#allocation8 + $0x178] sm:$0xf0]  ;;  %v989_v49 = vor.u32 %v1107_v46, %v988_v43  ;;  %v1052_v51 = vld [vmem:[#allocation8 + $0x1f0] sm:$0xf]  ;;  %1166 = vset.pattern.permute.xlu1 %v1282_v60  ;;  %1167 = vset.pattern.permute.xlu0 %v1282_v60 }
  0x27   :  { %v993_v50 = vor.u32 %v1106_v47, %v990_v48  ;;  %v1122_v53 = vld [vmem:[#allocation8 + $0x1f4] sm:$0xf]  ;;  %v980_v58 = vld [vmem:[#allocation8 + $0x160] sm:$0xf]  ;;  %v1105_v59 = vld [vmem:[#allocation8 + $0x164] sm:$0xf0] }
  0x28   :  { %v981_v61 = vor.u32 %v1105_v59, %v980_v58  ;;  %v1104_v62 = vld [vmem:[#allocation8 + $0x164] sm:$0xf]  ;;  %v982_v63 = vld [vmem:[#allocation8 + $0x168] sm:$0xf0]  ;;  %v1121_v4 = vld [vmem:[#allocation8 + $0x1e4] sm:$0xf0] }
  0x29   :  { %v985_v3 = vor.u32 %v1104_v62, %v982_v63  ;;  %v972_v11 = vld [vmem:[#allocation8 + $0x150] sm:$0xf]  ;;  %v1103_v12 = vld [vmem:[#allocation8 + $0x154] sm:$0xf0]  ;;  %v1102_v13 = vld [vmem:[#allocation8 + $0x154] sm:$0xf] }
  0x2a   :  { %v974_v15 = vld [vmem:[#allocation8 + $0x158] sm:$0xf0]  ;;  %v1036_v16 = vld [vmem:[#allocation8 + $0x1d0] sm:$0xf]  ;;  %v1118_v20 = vld [vmem:[#allocation8 + $0x1d4] sm:$0xf] }
  0x2b   :  { %581 = vmatpush.bf16.xpose.msra.mxu0 %v837_v52  ;;  %595 = vmatpush.bf16.xpose.msra.mxu1 %v841_v55  ;;  %v1123_v52 = vld [vmem:[#allocation8 + $0x1f4] sm:$0xf0]  ;;  %v1054_v55 = vld [vmem:[#allocation8 + $0x1f8] sm:$0xf0]  ;;  %v1100_v29 = vld [vmem:[#allocation8 + $0x144] sm:$0xf] }
  0x2c   :  { %609 = vmatpush.bf16.xpose.msra.mxu2 %v901_v56  ;;  %v1053_v54 = vor.u32 %v1123_v52, %v1052_v51  ;;  %v1057_v56 = vor.u32 %v1122_v53, %v1054_v55  ;;  %v1038_v21 = vld [vmem:[#allocation8 + $0x1d8] sm:$0xf0]  ;;  %v1028_v32 = vld [vmem:[#allocation8 + $0x1c0] sm:$0xf]  ;;  %v1117_v33 = vld [vmem:[#allocation8 + $0x1c4] sm:$0xf0] }
  0x2d   :  { %623 = vmatpush.bf16.xpose.msra.mxu3 %v905_v57  ;;  %v1169_v57 = vpop.eup %1168  ;;  %v1029_v36 = vor.u32 %v1117_v33, %v1028_v32  ;;  %v1116_v37 = vld [vmem:[#allocation8 + $0x1c4] sm:$0xf]  ;;  %v1030_v38 = vld [vmem:[#allocation8 + $0x1c8] sm:$0xf0]  ;;  %v956_v44 = vld [vmem:[#allocation8 + $0x130] sm:$0xf]  ;;  %v142_v32 = vunpack.c.h.bf16 %v1317_v1 }
  0x2e   :  { %vm105_vm0 = vweird.f32 %v1169_v57  ;;  %v1099_v46 = vld [vmem:[#allocation8 + $0x134] sm:$0xf0]  ;;  %v1098_v47 = vld [vmem:[#allocation8 + $0x134] sm:$0xf]  ;;  %v958_v48 = vld [vmem:[#allocation8 + $0x138] sm:$0xf0] }
  0x2f   :  { %v1020_v51 = vld [vmem:[#allocation8 + $0x1b0] sm:$0xf]  ;;  %v1115_v52 = vld [vmem:[#allocation8 + $0x1b4] sm:$0xf0]  ;;  %v1114_v55 = vld [vmem:[#allocation8 + $0x1b4] sm:$0xf] }
  0x30   :  { %v948_v63 = vld [vmem:[#allocation8 + $0x120] sm:$0xf]  ;;  %s776_s2 = sshll.u32 %s1283_s0, 4  ;;  %s778_s30 = sshll.u32 %s1354_s3, 4  ;;  %s777_s2 = int_to_ptr.vmem [resolvable:$true] %s776_s2  ;;  %s779_s30 = int_to_ptr.hbm [resolvable:$true] %s778_s30 }
  0x31   :  { %s1284_s4 = smov 256   ;;  %s1285_s5 = smov 16  }
  0x33   :  { %582 = vmatpush.bf16.xpose.msra.mxu0 %v829_v2  ;;  %596 = vmatpush.bf16.xpose.msra.mxu1 %v833_v5  ;;  %v1044_v2 = vld [vmem:[#allocation8 + $0x1e0] sm:$0xf]  ;;  %v1120_v5 = vld [vmem:[#allocation8 + $0x1e4] sm:$0xf] }
  0x34   :  { %610 = vmatpush.bf16.xpose.msra.mxu2 %v893_v6  ;;  %v1046_v6 = vld [vmem:[#allocation8 + $0x1e8] sm:$0xf0]  ;;  %v1045_v8 = vor.u32 %v1121_v4, %v1044_v2  ;;  %v1097_v2 = vld [vmem:[#allocation8 + $0x124] sm:$0xf0]  ;;  %v1096_v4 = vld [vmem:[#allocation8 + $0x124] sm:$0xf] }
  0x35   :  { %624 = vmatpush.bf16.xpose.msra.mxu3 %v897_v7  ;;  %v101_v7 = vmul.f32 127.0, %v1169_v57  ;;  %v1049_v9 = vor.u32 %v1120_v5, %v1046_v6  ;;  %v949_v6 = vor.u32 %v1097_v2, %v948_v63  ;;  %v1109_v63 = vld [vmem:[#allocation8 + $0x184] sm:$0xf0] }
  0x37   :  { %v102_v10 = vsub.f32 1.0, %v101_v7  ;;  %v950_v7 = vld [vmem:[#allocation8 + $0x128] sm:$0xf0] }
  0x39   :  { %v103_v22 = vmul.f32 %v1169_v57, %v102_v10 }
  0x3b   :  { %583 = vmatpush.bf16.xpose.msra.mxu0 %v821_v14  ;;  %597 = vmatpush.bf16.xpose.msra.mxu1 %v825_v17  ;;  %v973_v14 = vor.u32 %v1103_v12, %v972_v11  ;;  %v1119_v17 = vld [vmem:[#allocation8 + $0x1d4] sm:$0xf0]  ;;  %v104_v24 = vadd.f32 %v1169_v57, %v103_v22  ;;  %v953_v11 = vor.u32 %v1096_v4, %v950_v7  ;;  %v1113_v12 = vld [vmem:[#allocation8 + $0x1a4] sm:$0xf0]  ;;  %v998_v7 = vld [vmem:[#allocation8 + $0x188] sm:$0xf0] }
  0x3c   :  { %611 = vmatpush.bf16.xpose.msra.mxu2 %v885_v18  ;;  %v977_v18 = vor.u32 %v1102_v13, %v974_v15  ;;  %v1112_v13 = vld [vmem:[#allocation8 + $0x1a4] sm:$0xf] }
  0x3d   :  { %625 = vmatpush.bf16.xpose.msra.mxu3 %v889_v19  ;;  %v1037_v19 = vor.u32 %v1119_v17, %v1036_v16  ;;  %v1014_v16 = vld [vmem:[#allocation8 + $0x1a8] sm:$0xf0]  ;;  %v140_v17 = vunpack.c.h.bf16 %v1315_v0 }
  0x43   :  { %584 = vmatpush.bf16.xpose.msra.mxu0 %v813_v23  ;;  %598 = vmatpush.bf16.xpose.msra.mxu1 %v817_v27  ;;  %v1041_v23 = vor.u32 %v1118_v20, %v1038_v21  ;;  %v964_v27 = vld [vmem:[#allocation8 + $0x140] sm:$0xf] }
  0x44   :  { %612 = vmatpush.bf16.xpose.msra.mxu2 %v877_v28  ;;  %v1101_v28 = vld [vmem:[#allocation8 + $0x144] sm:$0xf0] }
  0x45   :  { %626 = vmatpush.bf16.xpose.msra.mxu3 %v881_v31  ;;  %v965_v30 = vor.u32 %v1101_v28, %v964_v27  ;;  %v966_v31 = vld [vmem:[#allocation8 + $0x148] sm:$0xf0]  ;;  %v141_v27 = vunpack.c.l.bf16 %v1317_v1 }
  0x4b   :  { %585 = vmatpush.bf16.xpose.msra.mxu0 %v805_v35  ;;  %599 = vmatpush.bf16.xpose.msra.mxu1 %v809_v39  ;;  %v969_v35 = vor.u32 %v1100_v29, %v966_v31  ;;  %v106_v39 = vsel %vm105_vm0, %v1169_v57, %v104_v24  ;;  %v1095_v31 = vld [vmem:[#allocation8 + $0x114] sm:$0xf0] }
  0x4c   :  { %613 = vmatpush.bf16.xpose.msra.mxu2 %v869_v40  ;;  %v1033_v40 = vor.u32 %v1116_v37, %v1030_v38  ;;  %v942_v37 = vld [vmem:[#allocation8 + $0x118] sm:$0xf0] }
  0x4d   :  { %627 = vmatpush.bf16.xpose.msra.mxu3 %v873_v45 }
  0x53   :  { %634 = vmatpush.bf16.xpose.msrb.mxu0 %v989_v49  ;;  %648 = vmatpush.bf16.xpose.msrb.mxu1 %v993_v50  ;;  %v957_v49 = vor.u32 %v1099_v46, %v956_v44  ;;  %v961_v50 = vor.u32 %v1098_v47, %v958_v48  ;;  %v1111_v46 = vld [vmem:[#allocation8 + $0x194] sm:$0xf0] }
  0x54   :  { %662 = vmatpush.bf16.xpose.msrb.mxu2 %v1053_v54  ;;  %v1021_v54 = vor.u32 %v1115_v52, %v1020_v51 }
  0x55   :  { %676 = vmatpush.bf16.xpose.msrb.mxu3 %v1057_v56  ;;  %v1022_v56 = vld [vmem:[#allocation8 + $0x1b8] sm:$0xf0] }
  0x56   :  { %v1025_v57 = vor.u32 %v1114_v55, %v1022_v56  ;;  %v932_v55 = vld [vmem:[#allocation8 + $0x100] sm:$0xf]  ;;  %v1093_v56 = vld [vmem:[#allocation8 + $0x104] sm:$0xf0] }
  0x5b   :  { %635 = vmatpush.bf16.xpose.msrb.mxu0 %v981_v61  ;;  %649 = vmatpush.bf16.xpose.msrb.mxu1 %v985_v3 }
  0x5c   :  { %663 = vmatpush.bf16.xpose.msrb.mxu2 %v1045_v8  ;;  %v1012_v8 = vld [vmem:[#allocation8 + $0x1a0] sm:$0xf] }
  0x5d   :  { %677 = vmatpush.bf16.xpose.msrb.mxu3 %v1049_v9  ;;  %v1013_v15 = vor.u32 %v1113_v12, %v1012_v8 }
  0x63   :  { %636 = vmatpush.bf16.xpose.msrb.mxu0 %v973_v14  ;;  %650 = vmatpush.bf16.xpose.msrb.mxu1 %v977_v18  ;;  %v139_v14 = vunpack.c.l.bf16 %v1315_v0 }
  0x64   :  { %664 = vmatpush.bf16.xpose.msrb.mxu2 %v1037_v19  ;;  %v1017_v19 = vor.u32 %v1112_v13, %v1014_v16 }
  0x65   :  { %678 = vmatpush.bf16.xpose.msrb.mxu3 %v1041_v23 }
  0x6b   :  { %637 = vmatpush.bf16.xpose.msrb.mxu0 %v965_v30  ;;  %651 = vmatpush.bf16.xpose.msrb.mxu1 %v969_v35  ;;  %v940_v30 = vld [vmem:[#allocation8 + $0x110] sm:$0xf] }
  0x6c   :  { %665 = vmatpush.bf16.xpose.msrb.mxu2 %v1029_v36  ;;  %v941_v35 = vor.u32 %v1095_v31, %v940_v30  ;;  %v1094_v36 = vld [vmem:[#allocation8 + $0x114] sm:$0xf] }
  0x6d   :  { %679 = vmatpush.bf16.xpose.msrb.mxu3 %v1033_v40  ;;  %v945_v44 = vor.u32 %v1094_v36, %v942_v37  ;;  %v737_v37 = vld [vmem:[#allocation10] sm:$0xf] }
  0x73   :  { %638 = vmatpush.bf16.xpose.msrb.mxu0 %v957_v49  ;;  %652 = vmatpush.bf16.xpose.msrb.mxu1 %v961_v50  ;;  %v1110_v49 = vld [vmem:[#allocation8 + $0x194] sm:$0xf]  ;;  %v1006_v50 = vld [vmem:[#allocation8 + $0x198] sm:$0xf0] }
  0x74   :  { %666 = vmatpush.bf16.xpose.msrb.mxu2 %v1021_v54  ;;  %v1009_v54 = vor.u32 %v1110_v49, %v1006_v50 }
  0x75   :  { %680 = vmatpush.bf16.xpose.msrb.mxu3 %v1025_v57 }
  0x7b   :  { %639 = vmatpush.bf16.xpose.msrb.mxu0 %v949_v6  ;;  %653 = vmatpush.bf16.xpose.msrb.mxu1 %v953_v11  ;;  %v1108_v6 = vld [vmem:[#allocation8 + $0x184] sm:$0xf] }
  0x7c   :  { %667 = vmatpush.bf16.xpose.msrb.mxu2 %v1013_v15  ;;  %v1001_v16 = vor.u32 %v1108_v6, %v998_v7 }
  0x7d   :  { %681 = vmatpush.bf16.xpose.msrb.mxu3 %v1017_v19 }
  0x83   :  { %640 = vmatpush.bf16.xpose.msrb.mxu0 %v941_v35  ;;  %654 = vmatpush.bf16.xpose.msrb.mxu1 %v945_v44 }
  0x85   :  { %682 = vmatpush.bf16.xpose.msrb.mxu3 %v1009_v54 }
  0x88   :  { %v90_v25 = vpop.xlane.xlu0 %89 }
  0x89   :  { %v94_v26 = vpack.c.bf16 %v90_v25, %v90_v25 }
  0x8b   :  { %v96_v34 = vunpack.c.l.bf16 %v94_v26 }
  0x8d   :  { %v98_v41 = vmax.f32 %v96_v34, 1e-05  ;;  %683 = vmatpush.bf16.xpose.msrb.mxu3 %v1001_v16 }
  0x8f   :  { %v107_v42 = vmul.f32 %v106_v39, %v98_v41 }
  0x90   :  { %v93_v43 = vpop.xlane.xlu0 %92 }
  0x91   :  { %1170 = vrcp.f32 %v107_v42  ;;  %156 = vst.msk [vmem:[#allocation3] sm:$0xff] %vm155_vm1, %v107_v42  ;;  %v95_v45 = vpack.c.bf16 %v93_v43, %v93_v43  ;;  %v120_v5 = vand.u32 2147483648, %v107_v42  ;;  %v118_v10 = vand.u32 2147483647, %v107_v42 }
  0x92   :  { %vm114_vm3 = vweird.f32 %v107_v42 }
  0x93   :  { %v97_v53 = vunpack.c.l.bf16 %v95_v45  ;;  %v121_v20 = vor.u32 1.1754944e-38, %v120_v5  ;;  %vm119_vm5 = vcmp.eq.f32.partialorder %v118_v10, 8.507059e+37  ;;  %v1004_v45 = vld [vmem:[#allocation8 + $0x190] sm:$0xf]  ;;  %v933_v5 = vor.u32 %v1093_v56, %v932_v55 }
  0x94   :  { %v1005_v48 = vor.u32 %v1111_v46, %v1004_v45 }
  0x95   :  { %v99_v58 = vmax.f32 %v97_v53, 1e-05  ;;  %641 = vmatpush.bf16.xpose.msrb.mxu0 %v933_v5 }
  0x96   :  { %668 = vmatpush.bf16.xpose.msrb.mxu2 %v1005_v48 }
  0x97   :  { %v1171_v59 = vpop.eup %1170  ;;  %v1322_v61 = vmul.f32 %v106_v39, %v99_v58  ;;  %v1092_v58 = vld [vmem:[#allocation8 + $0x104] sm:$0xf] }
  0x98   :  { %v110_v60 = vmul.f32 %v1171_v59, %v107_v42  ;;  %v717_v62 = vld [vmem:[#allocation3] sm:$0xff]  ;;  %vm115_vm2 = vweird.f32 %v1171_v59 }
  0x99   :  { %721 = vperm.xlu1 %1166, %v717_v62   ;;  %1172 = vrcp.f32 %v1322_v61  ;;  %157 = vst.msk [vmem:[#allocation3 + $0x8] sm:$0xff] %vm155_vm1, %v1322_v61  ;;  %vm116_vm4 = vmor %vm114_vm3, %vm115_vm2  ;;  %v133_v21 = vand.u32 2147483647, %v1322_v61  ;;  %v135_v24 = vand.u32 2147483648, %v1322_v61  ;;  %vm129_vm8 = vweird.f32 %v1322_v61 }
  0x9a   :  { %v111_v3 = vsub.f32 1.0, %v110_v60 }
  0x9b   :  { %vm1334_vm6 = vcmp.eq.f32.partialorder %v133_v21, 8.507059e+37  ;;  %v136_v40 = vor.u32 1.1754944e-38, %v135_v24 }
  0x9c   :  { %v112_v9 = vmul.f32 %v1171_v59, %v111_v3 }
  0x9e   :  { %v113_v18 = vadd.f32 %v1171_v59, %v112_v9 }
  0x9f   :  { %v1173_v22 = vpop.eup %1172 }
  0xa0   :  { %v117_v23 = vsel %vm116_vm4, %v1171_v59, %v113_v18  ;;  %v125_v26 = vmul.f32 %v1173_v22, %v1322_v61  ;;  %v718_v0 = vld [vmem:[#allocation3 + $0x8] sm:$0xff]  ;;  %vm130_vm7 = vweird.f32 %v1173_v22  ;;  %v996_v61 = vld [vmem:[#allocation8 + $0x180] sm:$0xf] }
  0xa1   :  { %v122_v25 = vsel %vm119_vm5, %v121_v20, %v117_v23  ;;  %726 = vperm.xlu1 %1166, %v718_v0   ;;  %vm131_vm9 = vmor %vm129_vm8, %vm130_vm7  ;;  %v934_v59 = vld [vmem:[#allocation8 + $0x108] sm:$0xf0]  ;;  %v997_v13 = vor.u32 %v1109_v63, %v996_v61 }
  0xa2   :  { %v143_v28 = vmul.f32 %v139_v14, %v122_v25  ;;  %v144_v29 = vmul.f32 %v140_v17, %v122_v25  ;;  %v126_v33 = vsub.f32 1.0, %v125_v26  ;;  %v937_v11 = vor.u32 %v1092_v58, %v934_v59 }
  0xa3   :  { %669 = vmatpush.bf16.xpose.msrb.mxu2 %v997_v13 }
  0xa4   :  { %v1124_v38 = vand.u32 2147483647, %v143_v28  ;;  %v1126_v39 = vcvt.f32.s32 %v143_v28  ;;  %v1129_v41 = vand.u32 2147483648, %v143_v28  ;;  %v1134_v42 = vcvt.f32.s32 %v144_v29  ;;  %655 = vmatpush.bf16.xpose.msrb.mxu1 %v937_v11 }
  0xa5   :  { %v127_v43 = vmul.f32 %v1173_v22, %v126_v33  ;;  %v1132_v1 = vand.u32 2147483647, %v144_v29  ;;  %v1137_v52 = vand.u32 2147483648, %v144_v29 }
  0xa6   :  { %v1127_v47 = vcvt.s32.f32 %v1126_v39  ;;  %v1135_v51 = vcvt.s32.f32 %v1134_v42  ;;  %vm1340_vm10 = vcmp.lt.f32.partialorder %v1124_v38, 8388608.0 }
  0xa7   :  { %v128_v53 = vadd.f32 %v1173_v22, %v127_v43  ;;  %vm1133_vm11 = vcmp.lt.f32.partialorder %v1132_v1, 8388608.0 }
  0xa8   :  { %v1128_v57 = vand.u32 2147483647, %v1127_v47  ;;  %v1136_v60 = vand.u32 2147483647, %v1135_v51 }
  0xa9   :  { %v132_v62 = vsel %vm131_vm9, %v1173_v22, %v128_v53 }
  0xaa   :  { %v1130_v3 = vor.u32 %v1129_v41, %v1128_v57  ;;  %v137_v4 = vsel %vm1334_vm6, %v136_v40, %v132_v62  ;;  %v1138_v8 = vor.u32 %v1137_v52, %v1136_v60  ;;  %v738_v40 = vunpack.c.l.bf16 %v737_v37 }
  0xab   :  { %v145_v9 = vmul.f32 %v141_v27, %v137_v4  ;;  %v146_v10 = vmul.f32 %v142_v32, %v137_v4 }
  0xac   :  { %v1131_v12 = vsel %vm1340_vm10, %v1130_v3, %v143_v28  ;;  %v1139_v14 = vsel %vm1133_vm11, %v1138_v8, %v144_v29  ;;  %v740_v43 = vperm.slane %v738_v40, 0  ;;  %v741_v44 = vperm.slane %v738_v40, 2 }
  0xad   :  { %v1142_v15 = vcvt.f32.s32 %v145_v9  ;;  %v151_v17 = vpack.c.bf16 %v1139_v14, %v1131_v12  ;;  %v1150_v18 = vcvt.f32.s32 %v146_v10  ;;  %v1140_v20 = vand.u32 2147483647, %v145_v9 }
  0xae   :  { %v1145_v23 = vand.u32 2147483648, %v145_v9  ;;  %v1148_v24 = vand.u32 2147483647, %v146_v10  ;;  %v1153_v26 = vand.u32 2147483648, %v146_v10  ;;  %v748_v1 = vperm.slane %v740_v43, 0 }
  0xaf   :  { %v1143_v19 = vcvt.s32.f32 %v1142_v15  ;;  %153 = vst [vmem:[#allocation2] sm:$0xff] %v151_v17  ;;  %v1151_v21 = vcvt.s32.f32 %v1150_v18  ;;  %vm1141_vm12 = vcmp.lt.f32.partialorder %v1140_v20, 8388608.0  ;;  %v749_v49 = vperm.slane %v741_v44, 0 }
  0xb0   :  { %vm1149_vm13 = vcmp.lt.f32.partialorder %v1148_v24, 8388608.0  ;;  %v742_v3 = vperm.slane %v738_v40, 4  ;;  %v743_v7 = vperm.slane %v738_v40, 6 }
  0xb1   :  { %v1144_v22 = vand.u32 2147483647, %v1143_v19  ;;  %v1152_v25 = vand.u32 2147483647, %v1151_v21 }
  0xb2   :  { %v750_v12 = vperm.slane %v742_v3, 0  ;;  %v751_v14 = vperm.slane %v743_v7, 0 }
  0xb3   :  { %v1146_v0 = vor.u32 %v1145_v23, %v1144_v22  ;;  %v1154_v27 = vor.u32 %v1153_v26, %v1152_v25 }
  0xb5   :  { %v1147_v28 = vsel %vm1141_vm12, %v1146_v0, %v145_v9  ;;  %v1155_v29 = vsel %vm1149_vm13, %v1154_v27, %v146_v10 }
  0xb6   :  { %v152_v30 = vpack.c.bf16 %v1155_v29, %v1147_v28  ;;  %v796_v31 = vld [vmem:[#allocation2] sm:$0xf]  ;;  %v1058_v33 = vld [vmem:[#allocation2 + $0x4] sm:$0xf] }
  0xb8   :  { %154 = vst [vmem:[#allocation2 + $0x8] sm:$0xff] %v152_v30 }
  0xbf   :  { %v1059_v32 = vld [vmem:[#allocation2 + $0x4] sm:$0xf0]  ;;  %v798_v34 = vld [vmem:[#allocation2 + $0x8] sm:$0xf0] }
  0xc0   :  { %v797_v35 = vor.u32 %v1059_v32, %v796_v31  ;;  %v801_v36 = vor.u32 %v1058_v33, %v798_v34 }
  0xc2   :  { %586 = vmatmul.bf16.vlgmr.msra.gmra.mxu0 %v797_v35  ;;  %600 = vmatmul.bf16.vlgmr.msra.gmra.mxu1 %v801_v36 }
  0xc3   :  { %614 = vmatmul.bf16.vlgmr.msra.gmra.mxu2 %v797_v35  ;;  %628 = vmatmul.bf16.vlgmr.msra.gmra.mxu3 %v801_v36 }
  0xd2   :  { %642 = vmatmul.bf16.vlgmr.msrb.gmra.mxu0 %v797_v35  ;;  %656 = vmatmul.bf16.vlgmr.msrb.gmra.mxu1 %v801_v36 }
  0xd3   :  { %670 = vmatmul.bf16.vlgmr.msrb.gmra.mxu2 %v797_v35  ;;  %684 = vmatmul.bf16.vlgmr.msrb.gmra.mxu3 %v801_v36 }
 0x10b   :  { %v722_v41 = vpop.permute.xlu1 %721 }
 0x113   :  { %v727_v56 = vpop.permute.xlu1 %726 }
 0x13f   :  { %v587_v38 = vpop.f32.mrf.mxu0  ;;  %v601_v39 = vpop.f32.mrf.mxu1 }
 0x140   :  { %v602_v42 = vadd.f32 %v601_v39, %v587_v38 }
 0x142   :  { %v729_v47 = vmul.f32 %v722_v41, %v602_v42 }
 0x144   :  { %v752_v53 = vadd.f32 %v748_v1, %v729_v47 }
 0x146   :  { %v615_v45 = vpop.f32.mrf.mxu2  ;;  %v629_v46 = vpop.f32.mrf.mxu3 }
 0x147   :  { %v630_v48 = vadd.f32 %v629_v46, %v615_v45  ;;  %v589_v50 = vpop.f32.mrf.mxu0  ;;  %v603_v51 = vpop.f32.mrf.mxu1 }
 0x148   :  { %v604_v55 = vadd.f32 %v603_v51, %v589_v50 }
 0x149   :  { %v730_v52 = vmul.f32 %v722_v41, %v630_v48 }
 0x14a   :  { %v733_v60 = vmul.f32 %v727_v56, %v604_v55 }
 0x14b   :  { %v753_v54 = vadd.f32 %v749_v49, %v730_v52 }
 0x14c   :  { %v756_v4 = vadd.f32 %v748_v1, %v733_v60 }
 0x14d   :  { %v760_v57 = vpack.c.bf16 %v753_v54, %v752_v53 }
 0x14e   :  { %v617_v58 = vpop.f32.mrf.mxu2  ;;  %v631_v59 = vpop.f32.mrf.mxu3 }
 0x14f   :  { %764 = vst [vmem:[#allocation11] sm:$0xff] %v760_v57  ;;  %v632_v62 = vadd.f32 %v631_v59, %v617_v58  ;;  %v643_v61 = vpop.f32.mrf.mxu0  ;;  %v657_v63 = vpop.f32.mrf.mxu1 }
 0x150   :  { %v658_v6 = vadd.f32 %v657_v63, %v643_v61 }
 0x151   :  { %v734_v2 = vmul.f32 %v727_v56, %v632_v62 }
 0x152   :  { %v731_v11 = vmul.f32 %v722_v41, %v658_v6 }
 0x153   :  { %v757_v5 = vadd.f32 %v749_v49, %v734_v2 }
 0x154   :  { %v754_v18 = vadd.f32 %v750_v12, %v731_v11 }
 0x155   :  { %v762_v8 = vpack.c.bf16 %v757_v5, %v756_v4 }
 0x156   :  { %v671_v9 = vpop.f32.mrf.mxu2  ;;  %v685_v10 = vpop.f32.mrf.mxu3 }
 0x157   :  { %766 = vst [vmem:[#allocation11 + $0x10] sm:$0xff] %v762_v8  ;;  %v686_v13 = vadd.f32 %v685_v10, %v671_v9  ;;  %v645_v15 = vpop.f32.mrf.mxu0  ;;  %v659_v16 = vpop.f32.mrf.mxu1 }
 0x158   :  { %v660_v20 = vadd.f32 %v659_v16, %v645_v15 }
 0x159   :  { %v732_v17 = vmul.f32 %v722_v41, %v686_v13 }
 0x15a   :  { %v735_v24 = vmul.f32 %v727_v56, %v660_v20 }
 0x15b   :  { %v755_v19 = vadd.f32 %v751_v14, %v732_v17 }
 0x15c   :  { %v758_v0 = vadd.f32 %v750_v12, %v735_v24 }
 0x15d   :  { %v761_v21 = vpack.c.bf16 %v755_v19, %v754_v18 }
 0x15e   :  { %v673_v22 = vpop.f32.mrf.mxu2  ;;  %v687_v23 = vpop.f32.mrf.mxu3 }
 0x15f   :  { %765 = vst [vmem:[#allocation11 + $0x8] sm:$0xff] %v761_v21  ;;  %v688_v25 = vadd.f32 %v687_v23, %v673_v22 }
 0x161   :  { %v736_v26 = vmul.f32 %v727_v56, %v688_v25 }
 0x163   :  { %v759_v27 = vadd.f32 %v751_v14, %v736_v26 }
 0x165   :  { %v763_v28 = vpack.c.bf16 %v759_v27, %v758_v0 }
 0x167   :  { %767 = vst [vmem:[#allocation11 + $0x18] sm:$0xff] %v763_v28 }
 0x168   :  { %784 = dma.vmem_to_hbm [thread:$0]  %s777_s2, 512, %s779_s30, [#allocation7], %s1284_s4, %s1284_s4, %s1285_s5  }
 0x169   :  { %1274 = dma.done.wait [#allocation7], 512  }
 0x16a   :  { %1275 = vsyncadd [#allocation7], 4294966784 }
 0x16b   :  { %789 = vsyncpa [#allocation6], 1 }
 0x16c   :  { %790 = vsyncpa [#allocation9], 1 }
 0x16d   :  { %791 = vsyncpa [#allocation7], 1 }

</bundles_post_ra>
